<compile_context>
chip_gen: v6e
topology: v6e:2x2x1
jax: 0.10.0
libtpu: 0.0.40
codegen_flags: <defaults>
</compile_context>

<pallas_src>
import functools

import numpy as np
import jax
import jax.numpy as jnp
from jax import lax
from jax.experimental import pallas as pl
from jax.experimental.pallas import tpu as pltpu

EPS = 1e-5


def _residual_block_kernel(x_ref, a_ref, mask_ref, gb_ref, out_ref, *, c, inv_m):
    nh, wc = x_ref.shape
    x = x_ref[...]                        # (N*H, W*C) f32, lane-dense
    m_up = mask_ref[0]                    # (NH, WC): 1.0 where row h-1 is in-image
    m_dn = mask_ref[1]                    # (NH, WC): 1.0 where row h+1 is in-image

    def conv3x3(src, tap_idx):
        # Vertical halo via XLU sublane rotates; masks zero rows whose
        # neighbour crosses an image boundary (incl. the circular wrap rows).
        t_up = pltpu.roll(src, 1, axis=0) * m_up          # row h-1 neighbour
        t_dn = pltpu.roll(src, nh - 1, axis=0) * m_dn     # row h+1 neighbour
        # Fused taps: one (NH, 3*WC) @ (3*WC, WC) bf16 matmul, f32 accumulate.
        lhs = jnp.concatenate([t_up, src, t_dn], axis=1).astype(jnp.bfloat16)
        return jnp.dot(lhs, a_ref[tap_idx], preferred_element_type=jnp.float32)

    def batchnorm(y, g, b):
        # Training-mode BN (batch stats, biased variance).
        # Sublane reduce first, then fold the W groups with a lane roll-tree;
        # sum(y) and sum(y*y) ride together so the reductions overlap.
        s = jnp.concatenate([jnp.sum(y, axis=0, keepdims=True),
                             jnp.sum(y * y, axis=0, keepdims=True)], axis=0)
        shift = c
        while shift < wc:                 # log2(W) circular lane rotates
            s = s + pltpu.roll(s, shift, axis=1)
            shift *= 2
        mean = s[0:1, :] * inv_m          # (1, WC), per-channel mean tiled over W
        var = s[1:2, :] * inv_m - mean * mean
        return (y - mean) * (lax.rsqrt(var + EPS) * g) + b

    # conv1 -> bn1 -> relu
    mid = jnp.maximum(
        batchnorm(conv3x3(x, 0), gb_ref[0:1, :], gb_ref[1:2, :]), 0.0)
    # conv2 -> bn2 -> +residual -> relu
    y2 = batchnorm(conv3x3(mid, 1), gb_ref[2:3, :], gb_ref[3:4, :])
    out_ref[...] = jnp.maximum(y2 + x, 0.0)


def build_residual_block_consts(w1_oihw, w2_oihw, g1, b1, g2, b2, N, H, W, C):
    """One-time, host-side (numpy) constant construction.  [rev#1]"""
    assert W & (W - 1) == 0, "BN lane roll-tree assumes W is a power of two"
    WC, NH = W * C, N * H

    def tap_matrix(w_oihw):
        # OIHW -> (ky, kx, Cin, Cout); for each vertical tap ky build the
        # block-banded (WC, WC) matrix folding horizontal taps + channel mix,
        # then stack the three taps along K -> (3*WC, WC).
        w = np.transpose(np.asarray(w_oihw, np.float32), (2, 3, 1, 0))
        blocks = []
        for ky in range(3):
            a = np.zeros((WC, WC), np.float32)
            for kx in range(3):
                a += np.kron(np.eye(W, k=1 - kx, dtype=np.float32), w[ky, kx])
            blocks.append(a)
        return np.concatenate(blocks, axis=0)

    a_stk = np.stack([tap_matrix(w1_oihw), tap_matrix(w2_oihw)])  # (2, 3WC, WC)

    # per-image vertical-halo validity masks, pre-broadcast to (2, NH, WC)
    h_idx = np.arange(NH) % H
    m_up = (h_idx >= 1).astype(np.float32)
    m_dn = (h_idx <= H - 2).astype(np.float32)
    mask = np.ascontiguousarray(
        np.broadcast_to(np.stack([m_up, m_dn])[:, :, None], (2, NH, WC)))

    def tile_c(v):                         # per-channel param -> (1, WC) lane layout
        return np.tile(np.asarray(v, np.float32).reshape(1, C), (1, W))

    gb = np.concatenate([tile_c(g1), tile_c(b1), tile_c(g2), tile_c(b2)], axis=0)

    return (jnp.asarray(a_stk, dtype=jnp.bfloat16),   # weights in bf16  [rev#3]
            jnp.asarray(mask, dtype=jnp.float32),
            jnp.asarray(gb, dtype=jnp.float32))


@functools.partial(jax.jit, static_argnames=("n", "h", "w", "c"))
def residual_block_apply(x_nhwc, a_stk, mask, gb, *, n, h, w, c):
    nh, wc = n * h, w * c
    x2d = x_nhwc.astype(jnp.float32).reshape(nh, wc)   # row-major identical to NHWC
    kernel = functools.partial(_residual_block_kernel, c=c, inv_m=1.0 / (n * h * w))
    vmem = pl.BlockSpec(memory_space=pltpu.MemorySpace.VMEM)
    out2d = pl.pallas_call(
        kernel,
        out_shape=jax.ShapeDtypeStruct((nh, wc), jnp.float32),
        in_specs=[vmem] * 4,
        out_specs=vmem,
    )(x2d, a_stk, mask, gb)
    return out2d.reshape(n, h, w, c)


def residual_block_ref(x_nhwc, w1_oihw, w2_oihw, g1, b1, g2, b2):
    """Pure-JAX f32 reference (NHWC) for correctness checking."""
    def conv(x, w_oihw):
        w_hwio = jnp.transpose(w_oihw, (2, 3, 1, 0))
        return lax.conv_general_dilated(
            x, w_hwio, window_strides=(1, 1), padding="SAME",
            dimension_numbers=("NHWC", "HWIO", "NHWC"))

    def bn(y, g, b):
        mean = jnp.mean(y, axis=(0, 1, 2), keepdims=True)
        var = jnp.mean((y - mean) ** 2, axis=(0, 1, 2), keepdims=True)
        return (y - mean) * lax.rsqrt(var + EPS) * g + b

    out = jnp.maximum(bn(conv(x_nhwc, w1_oihw), g1, b1), 0.0)
    out = bn(conv(out, w2_oihw), g2, b2)
    return jnp.maximum(out + x_nhwc, 0.0)


if __name__ == "__main__":
    N, C, H, W = 2, 8, 16, 16  # PyTorch input would be NCHW (2, 8, 16, 16)

    key = jax.random.PRNGKey(0)
    kx, kw1, kw2 = jax.random.split(key, 3)

    x_nchw = jax.random.normal(kx, (N, C, H, W), dtype=jnp.float32)
    x_nhwc = jnp.transpose(x_nchw, (0, 2, 3, 1))

    # deterministic parameter init (conv: small random, BN: PyTorch defaults)
    w1 = 0.1 * jax.random.normal(kw1, (C, C, 3, 3), dtype=jnp.float32)
    w2 = 0.1 * jax.random.normal(kw2, (C, C, 3, 3), dtype=jnp.float32)
    g1 = jnp.ones((C,), jnp.float32)
    b1 = jnp.zeros((C,), jnp.float32)
    g2 = jnp.ones((C,), jnp.float32)
    b2 = jnp.zeros((C,), jnp.float32)

    # Constants built once, on the host, outside the per-call path.  [rev#1]
    a_stk, mask, gb = build_residual_block_consts(
        np.asarray(w1), np.asarray(w2), np.asarray(g1), np.asarray(b1),
        np.asarray(g2), np.asarray(b2), N, H, W, C)

    out = residual_block_apply(x_nhwc, a_stk, mask, gb, n=N, h=H, w=W, c=C)
    out = jax.block_until_ready(out)

    ref = residual_block_ref(x_nhwc, w1, w2, g1, b1, g2, b2)
    assert out.shape == (N, H, W, C)
    # Tolerance relaxed vs. the f32 version because the conv tap matrices /
    # matmul operands are bf16 (per review); elementwise math stays f32.
    assert jnp.allclose(out, ref, atol=3e-2, rtol=3e-2), \
        f"max abs err {jnp.max(jnp.abs(out - ref))}"

    print("KERNEL_OK")
</pallas_src>

<mosaic_0001>
module attributes {stable_mosaic.version = 11 : i64} {
  func.func @_residual_block_kernel(%arg0: memref<32x128xf32, #tpu.memory_space<vmem>>, %arg1: memref<2x384x128xbf16, #tpu.memory_space<vmem>>, %arg2: memref<2x32x128xf32, #tpu.memory_space<vmem>>, %arg3: memref<4x128xf32, #tpu.memory_space<vmem>>, %arg4: memref<32x128xf32, #tpu.memory_space<vmem>>) attributes {dimension_semantics = [], scalar_prefetch = 0 : i64, scratch_operands = 0 : i64, tpu.core_type = #tpu.core_type<tc>} {
    %c0 = arith.constant 0 : index
    %c0_0 = arith.constant 0 : index
    %0 = vector.load %arg0[%c0, %c0_0] : memref<32x128xf32, #tpu.memory_space<vmem>>, vector<32x128xf32>
    %c0_1 = arith.constant 0 : index
    %c0_2 = arith.constant 0 : index
    %c0_3 = arith.constant 0 : index
    %1 = vector.load %arg2[%c0_1, %c0_2, %c0_3] : memref<2x32x128xf32, #tpu.memory_space<vmem>>, vector<1x32x128xf32>
    %2 = vector.shape_cast %1 : vector<1x32x128xf32> to vector<32x128xf32>
    %c1 = arith.constant 1 : index
    %c0_4 = arith.constant 0 : index
    %c0_5 = arith.constant 0 : index
    %3 = vector.load %arg2[%c1, %c0_4, %c0_5] : memref<2x32x128xf32, #tpu.memory_space<vmem>>, vector<1x32x128xf32>
    %4 = vector.shape_cast %3 : vector<1x32x128xf32> to vector<32x128xf32>
    %c1_i32 = arith.constant 1 : i32
    %5 = tpu.dynamic_rotate %0 by %c1_i32 dim 0 : vector<32x128xf32>, i32 -> vector<32x128xf32>
    %6 = arith.mulf %5, %2 : vector<32x128xf32>
    %c31_i32 = arith.constant 31 : i32
    %7 = tpu.dynamic_rotate %0 by %c31_i32 dim 0 : vector<32x128xf32>, i32 -> vector<32x128xf32>
    %8 = arith.mulf %7, %4 : vector<32x128xf32>
    %9 = tpu.concatenate %6, %0, %8 in 1 : vector<32x128xf32>, vector<32x128xf32>, vector<32x128xf32> -> vector<32x384xf32>
    %10 = arith.truncf %9 : vector<32x384xf32> to vector<32x384xbf16>
    %c0_6 = arith.constant 0 : index
    %c0_7 = arith.constant 0 : index
    %c0_8 = arith.constant 0 : index
    %11 = vector.load %arg1[%c0_6, %c0_7, %c0_8] : memref<2x384x128xbf16, #tpu.memory_space<vmem>>, vector<1x384x128xbf16>
    %12 = vector.shape_cast %11 : vector<1x384x128xbf16> to vector<384x128xbf16>
    %cst = arith.constant dense<0.000000e+00> : vector<32x128xf32>
    %13 = tpu.matmul %10, %12, %cst {dimension_numbers = #tpu.dot_dimension_numbers<[1], [0], [0], [1], [0, 0, 1, 1], [], []>} : vector<32x384xbf16>, vector<384x128xbf16>, vector<32x128xf32> -> vector<32x128xf32>
    %c0_9 = arith.constant 0 : index
    %c0_10 = arith.constant 0 : index
    %14 = vector.load %arg3[%c0_9, %c0_10] : memref<4x128xf32, #tpu.memory_space<vmem>>, vector<1x128xf32>
    %c1_11 = arith.constant 1 : index
    %c0_12 = arith.constant 0 : index
    %15 = vector.load %arg3[%c1_11, %c0_12] : memref<4x128xf32, #tpu.memory_space<vmem>>, vector<1x128xf32>
    %cst_13 = arith.constant dense<0.000000e+00> : vector<128xf32>
    %16 = vector.multi_reduction <add>, %13, %cst_13 [0] : vector<32x128xf32> to vector<128xf32>
    %17 = vector.shape_cast %16 : vector<128xf32> to vector<1x128xf32>
    %18 = arith.mulf %13, %13 : vector<32x128xf32>
    %cst_14 = arith.constant dense<0.000000e+00> : vector<128xf32>
    %19 = vector.multi_reduction <add>, %18, %cst_14 [0] : vector<32x128xf32> to vector<128xf32>
    %20 = vector.shape_cast %19 : vector<128xf32> to vector<1x128xf32>
    %21 = tpu.concatenate %17, %20 in 0 : vector<1x128xf32>, vector<1x128xf32> -> vector<2x128xf32>
    %c8_i32 = arith.constant 8 : i32
    %22 = tpu.dynamic_rotate %21 by %c8_i32 dim 1 : vector<2x128xf32>, i32 -> vector<2x128xf32>
    %23 = arith.addf %21, %22 : vector<2x128xf32>
    %c16_i32 = arith.constant 16 : i32
    %24 = tpu.dynamic_rotate %23 by %c16_i32 dim 1 : vector<2x128xf32>, i32 -> vector<2x128xf32>
    %25 = arith.addf %23, %24 : vector<2x128xf32>
    %c32_i32 = arith.constant 32 : i32
    %26 = tpu.dynamic_rotate %25 by %c32_i32 dim 1 : vector<2x128xf32>, i32 -> vector<2x128xf32>
    %27 = arith.addf %25, %26 : vector<2x128xf32>
    %c64_i32 = arith.constant 64 : i32
    %28 = tpu.dynamic_rotate %27 by %c64_i32 dim 1 : vector<2x128xf32>, i32 -> vector<2x128xf32>
    %29 = arith.addf %27, %28 : vector<2x128xf32>
    %30 = vector.extract_strided_slice %29 {offsets = [0, 0], sizes = [1, 128], strides = [1, 1]} : vector<2x128xf32> to vector<1x128xf32>
    %cst_15 = arith.constant 0.001953125 : f32
    %31 = vector.broadcast %cst_15 : f32 to vector<1x128xf32>
    %32 = arith.mulf %30, %31 : vector<1x128xf32>
    %33 = vector.extract_strided_slice %29 {offsets = [1, 0], sizes = [1, 128], strides = [1, 1]} : vector<2x128xf32> to vector<1x128xf32>
    %cst_16 = arith.constant 0.001953125 : f32
    %34 = vector.broadcast %cst_16 : f32 to vector<1x128xf32>
    %35 = arith.mulf %33, %34 : vector<1x128xf32>
    %36 = arith.mulf %32, %32 : vector<1x128xf32>
    %37 = arith.subf %35, %36 : vector<1x128xf32>
    %38 = vector.broadcast %32 : vector<1x128xf32> to vector<32x128xf32>
    %39 = arith.subf %13, %38 : vector<32x128xf32>
    %cst_17 = arith.constant 9.99999974E-6 : f32
    %40 = vector.broadcast %cst_17 : f32 to vector<1x128xf32>
    %41 = arith.addf %37, %40 : vector<1x128xf32>
    %42 = math.rsqrt %41 : vector<1x128xf32>
    %43 = arith.mulf %42, %14 : vector<1x128xf32>
    %44 = vector.broadcast %43 : vector<1x128xf32> to vector<32x128xf32>
    %45 = arith.mulf %39, %44 : vector<32x128xf32>
    %46 = vector.broadcast %15 : vector<1x128xf32> to vector<32x128xf32>
    %47 = arith.addf %45, %46 : vector<32x128xf32>
    %cst_18 = arith.constant 0.000000e+00 : f32
    %48 = vector.broadcast %cst_18 : f32 to vector<32x128xf32>
    %49 = arith.maximumf %47, %48 : vector<32x128xf32>
    %c1_i32_19 = arith.constant 1 : i32
    %50 = tpu.dynamic_rotate %49 by %c1_i32_19 dim 0 : vector<32x128xf32>, i32 -> vector<32x128xf32>
    %51 = arith.mulf %50, %2 : vector<32x128xf32>
    %c31_i32_20 = arith.constant 31 : i32
    %52 = tpu.dynamic_rotate %49 by %c31_i32_20 dim 0 : vector<32x128xf32>, i32 -> vector<32x128xf32>
    %53 = arith.mulf %52, %4 : vector<32x128xf32>
    %54 = tpu.concatenate %51, %49, %53 in 1 : vector<32x128xf32>, vector<32x128xf32>, vector<32x128xf32> -> vector<32x384xf32>
    %55 = arith.truncf %54 : vector<32x384xf32> to vector<32x384xbf16>
    %c1_21 = arith.constant 1 : index
    %c0_22 = arith.constant 0 : index
    %c0_23 = arith.constant 0 : index
    %56 = vector.load %arg1[%c1_21, %c0_22, %c0_23] : memref<2x384x128xbf16, #tpu.memory_space<vmem>>, vector<1x384x128xbf16>
    %57 = vector.shape_cast %56 : vector<1x384x128xbf16> to vector<384x128xbf16>
    %cst_24 = arith.constant dense<0.000000e+00> : vector<32x128xf32>
    %58 = tpu.matmul %55, %57, %cst_24 {dimension_numbers = #tpu.dot_dimension_numbers<[1], [0], [0], [1], [0, 0, 1, 1], [], []>} : vector<32x384xbf16>, vector<384x128xbf16>, vector<32x128xf32> -> vector<32x128xf32>
    %c2 = arith.constant 2 : index
    %c0_25 = arith.constant 0 : index
    %59 = vector.load %arg3[%c2, %c0_25] : memref<4x128xf32, #tpu.memory_space<vmem>>, vector<1x128xf32>
    %c3 = arith.constant 3 : index
    %c0_26 = arith.constant 0 : index
    %60 = vector.load %arg3[%c3, %c0_26] : memref<4x128xf32, #tpu.memory_space<vmem>>, vector<1x128xf32>
    %cst_27 = arith.constant dense<0.000000e+00> : vector<128xf32>
    %61 = vector.multi_reduction <add>, %58, %cst_27 [0] : vector<32x128xf32> to vector<128xf32>
    %62 = vector.shape_cast %61 : vector<128xf32> to vector<1x128xf32>
    %63 = arith.mulf %58, %58 : vector<32x128xf32>
    %cst_28 = arith.constant dense<0.000000e+00> : vector<128xf32>
    %64 = vector.multi_reduction <add>, %63, %cst_28 [0] : vector<32x128xf32> to vector<128xf32>
    %65 = vector.shape_cast %64 : vector<128xf32> to vector<1x128xf32>
    %66 = tpu.concatenate %62, %65 in 0 : vector<1x128xf32>, vector<1x128xf32> -> vector<2x128xf32>
    %c8_i32_29 = arith.constant 8 : i32
    %67 = tpu.dynamic_rotate %66 by %c8_i32_29 dim 1 : vector<2x128xf32>, i32 -> vector<2x128xf32>
    %68 = arith.addf %66, %67 : vector<2x128xf32>
    %c16_i32_30 = arith.constant 16 : i32
    %69 = tpu.dynamic_rotate %68 by %c16_i32_30 dim 1 : vector<2x128xf32>, i32 -> vector<2x128xf32>
    %70 = arith.addf %68, %69 : vector<2x128xf32>
    %c32_i32_31 = arith.constant 32 : i32
    %71 = tpu.dynamic_rotate %70 by %c32_i32_31 dim 1 : vector<2x128xf32>, i32 -> vector<2x128xf32>
    %72 = arith.addf %70, %71 : vector<2x128xf32>
    %c64_i32_32 = arith.constant 64 : i32
    %73 = tpu.dynamic_rotate %72 by %c64_i32_32 dim 1 : vector<2x128xf32>, i32 -> vector<2x128xf32>
    %74 = arith.addf %72, %73 : vector<2x128xf32>
    %75 = vector.extract_strided_slice %74 {offsets = [0, 0], sizes = [1, 128], strides = [1, 1]} : vector<2x128xf32> to vector<1x128xf32>
    %cst_33 = arith.constant 0.001953125 : f32
    %76 = vector.broadcast %cst_33 : f32 to vector<1x128xf32>
    %77 = arith.mulf %75, %76 : vector<1x128xf32>
    %78 = vector.extract_strided_slice %74 {offsets = [1, 0], sizes = [1, 128], strides = [1, 1]} : vector<2x128xf32> to vector<1x128xf32>
    %cst_34 = arith.constant 0.001953125 : f32
    %79 = vector.broadcast %cst_34 : f32 to vector<1x128xf32>
    %80 = arith.mulf %78, %79 : vector<1x128xf32>
    %81 = arith.mulf %77, %77 : vector<1x128xf32>
    %82 = arith.subf %80, %81 : vector<1x128xf32>
    %83 = vector.broadcast %77 : vector<1x128xf32> to vector<32x128xf32>
    %84 = arith.subf %58, %83 : vector<32x128xf32>
    %cst_35 = arith.constant 9.99999974E-6 : f32
    %85 = vector.broadcast %cst_35 : f32 to vector<1x128xf32>
    %86 = arith.addf %82, %85 : vector<1x128xf32>
    %87 = math.rsqrt %86 : vector<1x128xf32>
    %88 = arith.mulf %87, %59 : vector<1x128xf32>
    %89 = vector.broadcast %88 : vector<1x128xf32> to vector<32x128xf32>
    %90 = arith.mulf %84, %89 : vector<32x128xf32>
    %91 = vector.broadcast %60 : vector<1x128xf32> to vector<32x128xf32>
    %92 = arith.addf %90, %91 : vector<32x128xf32>
    %93 = arith.addf %92, %0 : vector<32x128xf32>
    %cst_36 = arith.constant 0.000000e+00 : f32
    %94 = vector.broadcast %cst_36 : f32 to vector<32x128xf32>
    %95 = arith.maximumf %93, %94 : vector<32x128xf32>
    %c0_37 = arith.constant 0 : index
    %c0_38 = arith.constant 0 : index
    %96 = vector.load %arg4[%c0_37, %c0_38] : memref<32x128xf32, #tpu.memory_space<vmem>>, vector<32x128xf32>
    tpu.vector_store %arg4[%c0_37, %c0_38], %95 {strides = array<i32>} : memref<32x128xf32, #tpu.memory_space<vmem>>, vector<32x128xf32>,
    return
  }
}

</mosaic_0001>

<bundles_post_ra>
// kernel: residual_block_apply.1
= control target key start
LH: loop header
LB: loop body
LE: loop exit
PB: predicated region body
PF: predicated region fallthrough
CT: control target
= control target key end

     0   :  { %v35_v16 = vlaneseq  ;;  %vm379_vm2 = vcmask 1040384   ;;  %s1118_s8 = smov 16   ;;  %s1119_s9 = smov 32   ;;  %s1492_s1 = inlined_call_operand.vmem [shape: bf16[2,384,128], index: 1, kind: input, shape index: {}]   ;;  %s1493_s0 = inlined_call_operand.vmem [shape: f32[32,128], index: 0, kind: input, shape index: {}]   ;;  %s1494_s2 = inlined_call_operand.vmem [shape: f32[2,32,128], index: 2, kind: input, shape index: {}]   ;;  %s1495_s3 = inlined_call_operand.vmem [shape: f32[4,128], index: 3, kind: input, shape index: {}]   ;;  %s1496_s4 = inlined_call_operand.vmem [shape: f32[32,128], index: 4, kind: output, shape index: {}]  }
   0x1   :  { %v1065_v0 = vld [vmem:[%s1492_s1 + $0x78] sm:$0xff]   ;;  %v1068_v3 = vld [vmem:[%s1492_s1 + $0x70] sm:$0xff]   ;;  %v1071_v6 = vld [vmem:[%s1492_s1 + $0x68] sm:$0xff]   ;;  %s1120_s16 = smov 64  }
   0x2   :  { %v1066_v1 = vld [vmem:[%s1492_s1 + $0xb8] sm:$0xff]   ;;  %945 = vmatprep.subr.bf16.mxu0 %v1065_v0  ;;  %v1069_v4 = vld [vmem:[%s1492_s1 + $0xb0] sm:$0xff]   ;;  %v1072_v7 = vld [vmem:[%s1492_s1 + $0xa8] sm:$0xff]   ;;  %v1203_v20 = vshrl.u32 %v35_v16, 7 }
   0x3   :  { %v1067_v2 = vld [vmem:[%s1492_s1 + $0x38] sm:$0xff]   ;;  %1021 = vmatprep.subr.bf16.mxu1 %v1066_v1  ;;  %v1070_v5 = vld [vmem:[%s1492_s1 + $0x30] sm:$0xff]   ;;  %v1073_v8 = vld [vmem:[%s1492_s1 + $0x28] sm:$0xff]  }
   0x4   :  { %946 = vmatpush3.bf16.msra.mxu0 %v1067_v2  ;;  %1022 = vmatpush3.bf16.msra.mxu1 %v1066_v1  ;;  %v1074_v9 = vld [vmem:[%s1492_s1 + $0x60] sm:$0xff]   ;;  %v1077_v12 = vld [vmem:[%s1492_s1 + $0x58] sm:$0xff]   ;;  %v1080_v15 = vld [vmem:[%s1492_s1 + $0x50] sm:$0xff]   ;;  %vm50_vm0 = vcmp.lt.s32.totalorder %v1203_v20, 7  ;;  %vm37_vm1 = vcmp.lt.s32.totalorder %v1203_v20, 1 }
   0x5   :  { %947 = vmatprep.subr.bf16.mxu0 %v1068_v3  ;;  %1023 = vmatprep.subr.bf16.mxu1 %v1069_v4  ;;  %v1075_v10 = vld [vmem:[%s1492_s1 + $0xa0] sm:$0xff]   ;;  %v1078_v13 = vld [vmem:[%s1492_s1 + $0x98] sm:$0xff]   ;;  %v1081_v17 = vld [vmem:[%s1492_s1 + $0x90] sm:$0xff]  }
   0x6   :  { %v1076_v11 = vld [vmem:[%s1492_s1 + $0x20] sm:$0xff]   ;;  %v1079_v14 = vld [vmem:[%s1492_s1 + $0x18] sm:$0xff]   ;;  %v1082_v18 = vld [vmem:[%s1492_s1 + $0x10] sm:$0xff]  }
   0x7   :  { %v1083_v19 = vld [vmem:[%s1492_s1 + $0x48] sm:$0xff]   ;;  %v1214_v23 = vld [vmem:[%s1493_s0] sm:$0xff]  ;;  %v1224_v25 = vld [vmem:[%s1493_s0 + $0x18] sm:$0xff] }
   0x8   :  { %948 = vmatpush3.bf16.msra.mxu0 %v1070_v5  ;;  %1024 = vmatpush3.bf16.msra.mxu1 %v1069_v4  ;;  %v1084_v21 = vld [vmem:[%s1492_s1 + $0x88] sm:$0xff]   ;;  %v1086_v26 = vld [vmem:[%s1492_s1 + $0x40] sm:$0xff]   ;;  %v31_v28 = vrot.slane %v1214_v23, 7  ;;  %v1241_v31 = vld [vmem:[%s1493_s0 + $0x10] sm:$0xff]  ;;  %v46_v32 = vrot.slane %v1214_v23, 1  ;;  %v34_v39 = vrot.slane %v1224_v25, 7 }
   0x9   :  { %949 = vmatprep.subr.bf16.mxu0 %v1071_v6  ;;  %1025 = vmatprep.subr.bf16.mxu1 %v1072_v7  ;;  %v1085_v22 = vld [vmem:[%s1492_s1 + $0x8] sm:$0xff]   ;;  %v1087_v27 = vld [vmem:[%s1492_s1 + $0x80] sm:$0xff]   ;;  %v48_v37 = vrot.slane %v1241_v31, 1  ;;  %v1275_v42 = vld [vmem:[%s1494_s2 + $0x30] sm:$0xff]  ;;  %v49_v44 = vrot.slane %v1224_v25, 1  ;;  %v33_v45 = vrot.slane %v1241_v31, 7  ;;  %v63_v60 = vpack.c.bf16 %v1224_v25, %v1241_v31 }
   0xa   :  { %v1219_v24 = vld [vmem:[%s1493_s0 + $0x8] sm:$0xff]  ;;  %v1088_v33 = vld [vmem:[%s1492_s1] sm:$0xff]   ;;  %v1280_v43 = vld [vmem:[%s1494_s2 + $0x38] sm:$0xff]  ;;  %v41_v48 = vsel %vm37_vm1, %v34_v39, %v31_v28 }
   0xb   :  { %v32_v29 = vrot.slane %v1219_v24, 7  ;;  %v60_v30 = vpack.c.bf16 %v1219_v24, %v1214_v23  ;;  %v1250_v34 = vld [vmem:[%s1494_s2 + $0x20] sm:$0xff]  ;;  %v1255_v35 = vld [vmem:[%s1494_s2 + $0x28] sm:$0xff]  ;;  %v47_v36 = vrot.slane %v1219_v24, 1  ;;  %v51_v53 = vsel %vm50_vm0, %v48_v37, %v49_v44  ;;  %v1301_v55 = vld [vmem:[%s1494_s2 + $0x10] sm:$0xff] }
   0xc   :  { %950 = vmatpush3.bf16.msra.mxu0 %v1073_v8  ;;  %1026 = vmatpush3.bf16.msra.mxu1 %v1072_v7  ;;  %v1262_v38 = vld [vmem:[%s1494_s2] sm:$0xff]  ;;  %v1268_v40 = vld [vmem:[%s1494_s2 + $0x8] sm:$0xff]  ;;  %v54_v54 = vsel %vm50_vm0, %v49_v44, %v46_v32  ;;  %v1306_v56 = vld [vmem:[%s1494_s2 + $0x18] sm:$0xff]  ;;  %v57_v58 = vmul.f32 %v1275_v42, %v51_v53  ;;  %v38_v62 = vsel %vm37_vm1, %v33_v45, %v34_v39  ;;  %s1117_s2 = smov 8  }
   0xd   :  { %951 = vmatprep.subr.bf16.mxu0 %v1074_v9  ;;  %1027 = vmatprep.subr.bf16.mxu1 %v1075_v10  ;;  %v40_v41 = vsel %vm37_vm1, %v31_v28, %v32_v29  ;;  %v52_v46 = vsel %vm50_vm0, %v47_v36, %v48_v37  ;;  %v53_v47 = vsel %vm50_vm0, %v46_v32, %v47_v36 }
   0xe   :  { %289 = vmatprep.mubr.bf16.mxu0 %v60_v30  ;;  %v55_v49 = vmul.f32 %v1250_v34, %v53_v47  ;;  %v56_v50 = vmul.f32 %v1255_v35, %v52_v46  ;;  %v42_v51 = vmul.f32 %v41_v48, %v1262_v38  ;;  %v43_v52 = vmul.f32 %v40_v41, %v1268_v40 }
   0xf   :  { %v58_v59 = vmul.f32 %v1280_v43, %v54_v54  ;;  %v39_v63 = vsel %vm37_vm1, %v32_v29, %v33_v45  ;;  %v45_v2 = vmul.f32 %v38_v62, %v1306_v56 }
  0x10   :  { %952 = vmatpush3.bf16.msra.mxu0 %v1076_v11  ;;  %1028 = vmatpush3.bf16.msra.mxu1 %v1075_v10  ;;  %v61_v57 = vpack.c.bf16 %v56_v50, %v55_v49  ;;  %v59_v61 = vpack.c.bf16 %v43_v52, %v42_v51  ;;  %v44_v1 = vmul.f32 %v39_v63, %v1301_v55 }
  0x11   :  { %953 = vmatprep.subr.bf16.mxu0 %v1077_v12  ;;  %1029 = vmatprep.subr.bf16.mxu1 %v1078_v13  ;;  %v64_v0 = vpack.c.bf16 %v58_v59, %v57_v58 }
  0x12   :  { %1037 = vmatprep.mubr.bf16.mxu1 %v61_v57  ;;  %v62_v3 = vpack.c.bf16 %v45_v2, %v44_v1  ;;  %v1090_v2 = vld [vmem:[%s1492_s1 + $0xf8] sm:$0xff]  }
  0x14   :  { %954 = vmatpush3.bf16.msra.mxu0 %v1079_v14  ;;  %1030 = vmatpush3.bf16.msra.mxu1 %v1078_v13 }
  0x15   :  { %955 = vmatprep.subr.bf16.mxu0 %v1080_v15  ;;  %1031 = vmatprep.subr.bf16.mxu1 %v1081_v17 }
  0x18   :  { %956 = vmatpush3.bf16.msra.mxu0 %v1082_v18  ;;  %1032 = vmatpush3.bf16.msra.mxu1 %v1081_v17 }
  0x19   :  { %957 = vmatprep.subr.bf16.mxu0 %v1083_v19  ;;  %1033 = vmatprep.subr.bf16.mxu1 %v1084_v21 }
  0x1c   :  { %958 = vmatpush3.bf16.msra.mxu0 %v1085_v22  ;;  %1034 = vmatpush3.bf16.msra.mxu1 %v1084_v21 }
  0x1d   :  { %959 = vmatprep.subr.bf16.mxu0 %v1086_v26  ;;  %1035 = vmatprep.subr.bf16.mxu1 %v1087_v27 }
  0x20   :  { %960 = vmatpush3.bf16.msra.mxu0 %v1088_v33  ;;  %1036 = vmatpush3.bf16.msra.mxu1 %v1087_v27 }
  0x23   :  { %290 = vmatmul.mubr.bf16.vlgmr.msra.gmra.mxu0 %v59_v61  ;;  %1038 = vmatmul.mubr.bf16.vlgmr.msra.gmra.mxu1 %v64_v0  ;;  %v1089_v0 = vld [vmem:[%s1492_s1 + $0x138] sm:$0xff]  }
  0x24   :  { %297 = vmatprep.mubr.bf16.mxu0 %v63_v60  ;;  %983 = vmatprep.subr.bf16.mxu0 %v1089_v0 }
  0x25   :  { %984 = vmatpush3.bf16.msra.mxu0 %v1090_v2 }
  0x2b   :  { %298 = vmatmul.mubr.bf16.gmra.mxu0 %v62_v3  ;;  %v1091_v3 = vld [vmem:[%s1492_s1 + $0x178] sm:$0xff]  }
  0x2c   :  { %1041 = vmatprep.subr.bf16.mxu1 %v1091_v3 }
  0x2d   :  { %1042 = vmatpush3.bf16.msra.mxu1 %v1091_v3 }
  0xe3   :  { %v961_v4 = vpop.f32.mrf.mxu0  ;;  %v1039_v5 = vpop.f32.mrf.mxu1 }
  0xe5   :  { %v962_v6 = vpop.f32.mrf.mxu0  ;;  %v340_v7 = vpop.f32.mrf.mxu1 }
  0xe6   :  { %v963_v11 = vadd.f32 %v962_v6, %v961_v4  ;;  %v1093_v6 = vld [vmem:[%s1492_s1 + $0xf0] sm:$0xff]  }
  0xe7   :  { %v964_v8 = vpop.f32.mrf.mxu0  ;;  %v1040_v9 = vpop.f32.mrf.mxu1 }
  0xe8   :  { %v1320_v17 = vadd.f32 %v963_v11, %v340_v7  ;;  %v1094_v7 = vld [vmem:[%s1492_s1 + $0x170] sm:$0xff]   ;;  %v1098_v11 = vld [vmem:[%s1492_s1 + $0x120] sm:$0xff]  }
  0xe9   :  { %v965_v10 = vpop.f32.mrf.mxu0  ;;  %v343_v13 = vpop.f32.mrf.mxu1  ;;  %1043 = vmatprep.subr.bf16.mxu1 %v1094_v7 }
  0xea   :  { %v966_v12 = vadd.f32 %v965_v10, %v964_v8  ;;  %v366_v27 = vmul.f32 %v1320_v17, %v1320_v17  ;;  %1044 = vmatpush3.bf16.msra.mxu1 %v1094_v7  ;;  %v1095_v8 = vld [vmem:[%s1492_s1 + $0x128] sm:$0xff]  }
  0xeb   :  { %v967_v14 = vpop.f32.mrf.mxu0  ;;  %v1097_v10 = vld [vmem:[%s1492_s1 + $0x168] sm:$0xff]  }
  0xec   :  { %v1318_v15 = vadd.f32 %v966_v12, %v343_v13  ;;  %1045 = vmatprep.subr.bf16.mxu1 %v1097_v10  ;;  %v1099_v12 = vld [vmem:[%s1492_s1 + $0xe0] sm:$0xff]  }
  0xed   :  { %v968_v16 = vpop.f32.mrf.mxu0  ;;  %v1100_v13 = vld [vmem:[%s1492_s1 + $0x160] sm:$0xff]  }
  0xee   :  { %v969_v18 = vadd.f32 %v968_v16, %v967_v14  ;;  %v367_v21 = vmul.f32 %v1318_v15, %v1318_v15  ;;  %v357_v28 = vadd.f32 %v1318_v15, %v1320_v17  ;;  %1046 = vmatpush3.bf16.msra.mxu1 %v1097_v10  ;;  %v1101_v14 = vld [vmem:[%s1492_s1 + $0x118] sm:$0xff]  }
  0xef   :  { %v970_v19 = vpop.f32.mrf.mxu0  ;;  %1047 = vmatprep.subr.bf16.mxu1 %v1100_v13  ;;  %v1102_v16 = vld [vmem:[%s1492_s1 + $0xd8] sm:$0xff]  }
  0xf0   :  { %v1324_v22 = vadd.f32 %v1039_v5, %v969_v18  ;;  %v370_v32 = vadd.f32 %v367_v21, %v366_v27  ;;  %v1092_v5 = vld [vmem:[%s1492_s1 + $0x130] sm:$0xff]   ;;  %v1103_v18 = vld [vmem:[%s1492_s1 + $0x158] sm:$0xff]   ;;  %v1107_v27 = vld [vmem:[%s1492_s1 + $0x108] sm:$0xff]  }
  0xf1   :  { %v971_v26 = vpop.f32.mrf.mxu0  ;;  %985 = vmatprep.subr.bf16.mxu0 %v1092_v5  ;;  %v1105_v21 = vld [vmem:[%s1492_s1 + $0xd0] sm:$0xff]  }
  0xf2   :  { %v368_v29 = vmul.f32 %v1324_v22, %v1324_v22  ;;  %v972_v30 = vadd.f32 %v971_v26, %v970_v19  ;;  %v358_v33 = vadd.f32 %v357_v28, %v1324_v22  ;;  %986 = vmatpush3.bf16.msra.mxu0 %v1093_v6  ;;  %1048 = vmatpush3.bf16.msra.mxu1 %v1100_v13  ;;  %v1104_v19 = vld [vmem:[%s1492_s1 + $0x110] sm:$0xff]   ;;  %v1109_v28 = vld [vmem:[%s1492_s1 + $0x148] sm:$0xff]  }
  0xf3   :  { %987 = vmatprep.subr.bf16.mxu0 %v1095_v8  ;;  %1049 = vmatprep.subr.bf16.mxu1 %v1103_v18  ;;  %v1106_v26 = vld [vmem:[%s1492_s1 + $0x150] sm:$0xff]  }
  0xf4   :  { %v1333_v36 = vadd.f32 %v1040_v9, %v972_v30  ;;  %v371_v37 = vadd.f32 %v370_v32, %v368_v29  ;;  %v1096_v9 = vld [vmem:[%s1492_s1 + $0xe8] sm:$0xff]   ;;  %v1110_v30 = vld [vmem:[%s1492_s1 + $0x100] sm:$0xff]  }
  0xf5   :  { %v1108_v29 = vld [vmem:[%s1492_s1 + $0xc8] sm:$0xff]   ;;  %v1111_v32 = vld [vmem:[%s1492_s1 + $0xc0] sm:$0xff]  }
  0xf6   :  { %v359_v39 = vadd.f32 %v358_v33, %v1333_v36  ;;  %v369_v41 = vmul.f32 %v1333_v36, %v1333_v36  ;;  %988 = vmatpush3.bf16.msra.mxu0 %v1096_v9  ;;  %1050 = vmatpush3.bf16.msra.mxu1 %v1103_v18  ;;  %v1112_v33 = vld [vmem:[%s1492_s1 + $0x140] sm:$0xff]  }
  0xf7   :  { %989 = vmatprep.subr.bf16.mxu0 %v1098_v11  ;;  %1051 = vmatprep.subr.bf16.mxu1 %v1106_v26 }
  0xf8   :  { %v360_v44 = vrot.slane %v359_v39, 4  ;;  %v372_v45 = vadd.f32 %v371_v37, %v369_v41 }
  0xfa   :  { %v361_v46 = vadd.f32 %v360_v44, %v359_v39  ;;  %v373_v47 = vrot.slane %v372_v45, 4  ;;  %990 = vmatpush3.bf16.msra.mxu0 %v1099_v12  ;;  %1052 = vmatpush3.bf16.msra.mxu1 %v1106_v26 }
  0xfb   :  { %991 = vmatprep.subr.bf16.mxu0 %v1101_v14  ;;  %1053 = vmatprep.subr.bf16.mxu1 %v1109_v28 }
  0xfc   :  { %v362_v48 = vrot.slane %v361_v46, 2  ;;  %v374_v49 = vadd.f32 %v373_v47, %v372_v45 }
  0xfe   :  { %v363_v50 = vadd.f32 %v362_v48, %v361_v46  ;;  %v375_v51 = vrot.slane %v374_v49, 2  ;;  %992 = vmatpush3.bf16.msra.mxu0 %v1102_v16  ;;  %1054 = vmatpush3.bf16.msra.mxu1 %v1109_v28  ;;  %v355_v48 = vld [vmem:[%s1495_s3] sm:$0x1] }
  0xff   :  { %993 = vmatprep.subr.bf16.mxu0 %v1104_v19  ;;  %1055 = vmatprep.subr.bf16.mxu1 %v1112_v33 }
 0x100   :  { %v364_v52 = vrot.slane %v363_v50, 1  ;;  %v376_v53 = vadd.f32 %v375_v51, %v374_v49  ;;  %v401_v49 = vsub.s32 0, %v1203_v20 }
 0x102   :  { %v377_v54 = vrot.slane %v376_v53, 1  ;;  %v365_v57 = vadd.f32 %v364_v52, %v363_v50  ;;  %994 = vmatpush3.bf16.msra.mxu0 %v1105_v21  ;;  %1056 = vmatpush3.bf16.msra.mxu1 %v1112_v33  ;;  %v410_v50 = vrot.slane %v355_v48, 7  ;;  %v415_v52 = vsub.s32 1, %v1203_v20 }
 0x103   :  { %995 = vmatprep.subr.bf16.mxu0 %v1107_v27 }
 0x104   :  { %v378_v58 = vadd.f32 %v377_v54, %v376_v53 }
 0x106   :  { %v380_v59 = vsel %vm379_vm2, %v365_v57, %v378_v58  ;;  %996 = vmatpush3.bf16.msra.mxu0 %v1108_v29 }
 0x107   :  { %381 = vrot.lane.b32.xlu0 %v380_v59, %s1117_s2  ;;  %997 = vmatprep.subr.bf16.mxu0 %v1110_v30 }
 0x10a   :  { %998 = vmatpush3.bf16.msra.mxu0 %v1111_v32 }
 0x179   :  { %v382_v60 = vpop.permute.xlu0 %381 }
 0x17a   :  { %v383_v61 = vadd.f32 %v382_v60, %v380_v59 }
 0x17c   :  { %384 = vrot.lane.b32.xlu0 %v383_v61, %s1118_s8 }
 0x1ee   :  { %v385_v62 = vpop.permute.xlu0 %384 }
 0x1ef   :  { %v386_v63 = vadd.f32 %v385_v62, %v383_v61  ;;  %v871_v62 = vld [vmem:[%s1495_s3 + $0x1] ss:$0 sm:$0xff] }
 0x1f1   :  { %387 = vrot.lane.b32.xlu1 %v386_v63, %s1119_s9 }
 0x263   :  { %v388_v1 = vpop.permute.xlu1 %387 }
 0x264   :  { %v389_v4 = vadd.f32 %v388_v1, %v386_v63 }
 0x266   :  { %390 = vrot.lane.b32.xlu1 %v389_v4, %s1120_s16 }
 0x2d8   :  { %v391_v37 = vpop.permute.xlu1 %390 }
 0x2d9   :  { %v392_v39 = vadd.f32 %v391_v37, %v389_v4 }
 0x2db   :  { %v393_v41 = vmul.f32 0.001953125, %v392_v39 }
 0x2dd   :  { %v394_v44 = vmul.f32 %v393_v41, %v393_v41  ;;  %v402_v51 = vrot.slane %v393_v41, %v401_v49 }
 0x2df   :  { %v396_v45 = vrot.slane %v394_v44, 7  ;;  %v405_v57 = vsub.f32 %v1324_v22, %v402_v51  ;;  %v406_v58 = vsub.f32 %v1333_v36, %v402_v51  ;;  %v403_v60 = vsub.f32 %v1320_v17, %v402_v51 }
 0x2e0   :  { %v404_v61 = vsub.f32 %v1318_v15, %v402_v51 }
 0x2e1   :  { %v398_v46 = vsub.f32 %v393_v41, %v396_v45 }
 0x2e3   :  { %v407_v47 = vadd.f32 1e-05, %v398_v46 }
 0x2e5   :  { %1113 = vrsqrt.f32 %v407_v47 }
 0x2f2   :  { %v1114_v53 = vpop.eup %1113 }
 0x2f3   :  { %v412_v54 = vmul.f32 %v1114_v53, %v410_v50 }
 0x2f5   :  { %v416_v59 = vrot.slane %v412_v54, %v415_v52 }
 0x2f7   :  { %v419_v63 = vmul.f32 %v416_v59, %v405_v57  ;;  %v420_v0 = vmul.f32 %v416_v59, %v406_v58  ;;  %v417_v1 = vmul.f32 %v416_v59, %v403_v60  ;;  %v418_v2 = vmul.f32 %v416_v59, %v404_v61 }
 0x2f9   :  { %v425_v3 = vadd.f32 %v871_v62, %v417_v1  ;;  %v426_v4 = vadd.f32 %v871_v62, %v418_v2  ;;  %v428_v22 = vadd.f32 %v871_v62, %v420_v0  ;;  %v427_v5 = vadd.f32 %v871_v62, %v419_v63 }
 0x2fb   :  { %v429_v36 = vmax.f32 %v425_v3, 0.0  ;;  %v430_v6 = vmax.f32 %v426_v4, 0.0  ;;  %v432_v7 = vmax.f32 %v428_v22, 0.0  ;;  %v431_v8 = vmax.f32 %v427_v5, 0.0 }
 0x2fd   :  { %v433_v9 = vrot.slane %v429_v36, 7  ;;  %v434_v17 = vrot.slane %v430_v6, 7  ;;  %v458_v10 = vpack.c.bf16 %v430_v6, %v429_v36  ;;  %v436_v15 = vrot.slane %v432_v7, 7 }
 0x2fe   :  { %v445_v11 = vrot.slane %v429_v36, 1  ;;  %v446_v12 = vrot.slane %v430_v6, 1  ;;  %v447_v13 = vrot.slane %v431_v8, 1  ;;  %v448_v18 = vrot.slane %v432_v7, 1 }
 0x2ff   :  { %688 = vmatprep.mubr.bf16.mxu0 %v458_v10  ;;  %v439_v14 = vsel %vm37_vm1, %v433_v9, %v434_v17  ;;  %v440_v16 = vsel %vm37_vm1, %v436_v15, %v433_v9  ;;  %v435_v19 = vrot.slane %v431_v8, 7  ;;  %v461_v41 = vpack.c.bf16 %v432_v7, %v431_v8 }
 0x300   :  { %v441_v21 = vmul.f32 %v440_v16, %v1262_v38  ;;  %v442_v26 = vmul.f32 %v439_v14, %v1268_v40  ;;  %v450_v27 = vsel %vm50_vm0, %v446_v12, %v447_v13  ;;  %v451_v28 = vsel %vm50_vm0, %v445_v11, %v446_v12 }
 0x301   :  { %v453_v29 = vmul.f32 %v1250_v34, %v451_v28  ;;  %v454_v30 = vmul.f32 %v1255_v35, %v450_v27  ;;  %v449_v32 = vsel %vm50_vm0, %v447_v13, %v448_v18  ;;  %v452_v33 = vsel %vm50_vm0, %v448_v18, %v445_v11 }
 0x302   :  { %v457_v37 = vpack.c.bf16 %v442_v26, %v441_v21  ;;  %v455_v38 = vmul.f32 %v1275_v42, %v449_v32  ;;  %v456_v40 = vmul.f32 %v1280_v43, %v452_v33  ;;  %v437_v44 = vsel %vm37_vm1, %v435_v19, %v436_v15 }
 0x303   :  { %v459_v39 = vpack.c.bf16 %v454_v30, %v453_v29  ;;  %v438_v34 = vsel %vm37_vm1, %v434_v17, %v435_v19  ;;  %v444_v46 = vmul.f32 %v437_v44, %v1306_v56 }
 0x304   :  { %689 = vmatmul.mubr.bf16.vlgmr.msra.gmra.mxu0 %v457_v37  ;;  %v462_v35 = vpack.c.bf16 %v456_v40, %v455_v38  ;;  %v443_v45 = vmul.f32 %v438_v34, %v1301_v55 }
 0x305   :  { %1057 = vmatprep.mubr.bf16.mxu1 %v459_v39  ;;  %696 = vmatprep.mubr.bf16.mxu0 %v461_v41 }
 0x306   :  { %1058 = vmatmul.mubr.bf16.vlgmr.msra.gmra.mxu1 %v462_v35  ;;  %v460_v42 = vpack.c.bf16 %v444_v46, %v443_v45 }
 0x30c   :  { %697 = vmatmul.mubr.bf16.gmra.mxu0 %v460_v42  ;;  %v754_v42 = vld [vmem:[%s1495_s3 + $0x2] sm:$0x1] }
 0x3c4   :  { %v999_v43 = vpop.f32.mrf.mxu0 }
 0x3c6   :  { %v1059_v47 = vpop.f32.mrf.mxu1  ;;  %v1000_v48 = vpop.f32.mrf.mxu0 }
 0x3c7   :  { %v1001_v57 = vadd.f32 %v1000_v48, %v999_v43  ;;  %v808_v43 = vrot.slane %v754_v42, 7 }
 0x3c8   :  { %v739_v50 = vpop.f32.mrf.mxu1  ;;  %v1002_v51 = vpop.f32.mrf.mxu0 }
 0x3c9   :  { %v740_v63 = vadd.f32 %v1001_v57, %v739_v50 }
 0x3ca   :  { %v1060_v53 = vpop.f32.mrf.mxu1  ;;  %v1003_v54 = vpop.f32.mrf.mxu0 }
 0x3cb   :  { %v1004_v58 = vadd.f32 %v1003_v54, %v1002_v51  ;;  %v765_v3 = vmul.f32 %v740_v63, %v740_v63 }
 0x3cc   :  { %v742_v59 = vpop.f32.mrf.mxu1  ;;  %v1005_v60 = vpop.f32.mrf.mxu0 }
 0x3cd   :  { %v1455_v61 = vadd.f32 %v1004_v58, %v742_v59  ;;  %v944_v59 = vld [vmem:[%s1495_s3 + $0x3] ss:$0 sm:$0xff] }
 0x3ce   :  { %v1006_v62 = vpop.f32.mrf.mxu0 }
 0x3cf   :  { %v1007_v55 = vadd.f32 %v1006_v62, %v1005_v60  ;;  %v766_v56 = vmul.f32 %v1455_v61, %v1455_v61  ;;  %v756_v4 = vadd.f32 %v1455_v61, %v740_v63 }
 0x3d0   :  { %v1008_v0 = vpop.f32.mrf.mxu0 }
 0x3d1   :  { %v748_v1 = vadd.f32 %v1059_v47, %v1007_v55  ;;  %v769_v36 = vadd.f32 %v766_v56, %v765_v3 }
 0x3d2   :  { %v1009_v2 = vpop.f32.mrf.mxu0 }
 0x3d3   :  { %v767_v22 = vmul.f32 %v748_v1, %v748_v1  ;;  %v1010_v5 = vadd.f32 %v1009_v2, %v1008_v0  ;;  %v757_v6 = vadd.f32 %v756_v4, %v748_v1 }
 0x3d5   :  { %v751_v7 = vadd.f32 %v1060_v53, %v1010_v5  ;;  %v770_v8 = vadd.f32 %v769_v36, %v767_v22 }
 0x3d7   :  { %v758_v9 = vadd.f32 %v757_v6, %v751_v7  ;;  %v768_v17 = vmul.f32 %v751_v7, %v751_v7 }
 0x3d9   :  { %v759_v10 = vrot.slane %v758_v9, 4  ;;  %v771_v15 = vadd.f32 %v770_v8, %v768_v17 }
 0x3db   :  { %v760_v11 = vadd.f32 %v759_v10, %v758_v9  ;;  %v772_v12 = vrot.slane %v771_v15, 4 }
 0x3dd   :  { %v761_v13 = vrot.slane %v760_v11, 2  ;;  %v773_v14 = vadd.f32 %v772_v12, %v771_v15 }
 0x3df   :  { %v762_v16 = vadd.f32 %v761_v13, %v760_v11  ;;  %v774_v18 = vrot.slane %v773_v14, 2 }
 0x3e1   :  { %v763_v19 = vrot.slane %v762_v16, 1  ;;  %v775_v21 = vadd.f32 %v774_v18, %v773_v14 }
 0x3e3   :  { %v776_v26 = vrot.slane %v775_v21, 1  ;;  %v764_v27 = vadd.f32 %v763_v19, %v762_v16 }
 0x3e5   :  { %v777_v28 = vadd.f32 %v776_v26, %v775_v21 }
 0x3e7   :  { %v778_v29 = vsel %vm379_vm2, %v764_v27, %v777_v28 }
 0x3e8   :  { %779 = vrot.lane.b32.xlu0 %v778_v29, %s1117_s2 }
 0x45a   :  { %v780_v30 = vpop.permute.xlu0 %779 }
 0x45b   :  { %v781_v32 = vadd.f32 %v780_v30, %v778_v29 }
 0x45d   :  { %782 = vrot.lane.b32.xlu1 %v781_v32, %s1118_s8 }
 0x4cf   :  { %v783_v33 = vpop.permute.xlu1 %782 }
 0x4d0   :  { %v784_v37 = vadd.f32 %v783_v33, %v781_v32 }
 0x4d2   :  { %785 = vrot.lane.b32.xlu0 %v784_v37, %s1119_s9 }
 0x544   :  { %v786_v38 = vpop.permute.xlu0 %785 }
 0x545   :  { %v787_v40 = vadd.f32 %v786_v38, %v784_v37 }
 0x547   :  { %788 = vrot.lane.b32.xlu1 %v787_v40, %s1120_s16 }
 0x5b9   :  { %v789_v39 = vpop.permute.xlu1 %788 }
 0x5ba   :  { %v790_v41 = vadd.f32 %v789_v39, %v787_v40 }
 0x5bc   :  { %v791_v44 = vmul.f32 0.001953125, %v790_v41 }
 0x5be   :  { %v792_v34 = vmul.f32 %v791_v44, %v791_v44  ;;  %v800_v47 = vrot.slane %v791_v44, %v401_v49 }
 0x5c0   :  { %v794_v35 = vrot.slane %v792_v34, 7  ;;  %v801_v51 = vsub.f32 %v740_v63, %v800_v47  ;;  %v802_v53 = vsub.f32 %v1455_v61, %v800_v47  ;;  %v803_v54 = vsub.f32 %v748_v1, %v800_v47 }
 0x5c1   :  { %v804_v57 = vsub.f32 %v751_v7, %v800_v47 }
 0x5c2   :  { %v796_v45 = vsub.f32 %v791_v44, %v794_v35 }
 0x5c4   :  { %v805_v46 = vadd.f32 1e-05, %v796_v45 }
 0x5c6   :  { %1115 = vrsqrt.f32 %v805_v46 }
 0x5d3   :  { %v1116_v48 = vpop.eup %1115 }
 0x5d4   :  { %v810_v50 = vmul.f32 %v1116_v48, %v808_v43 }
 0x5d6   :  { %v814_v58 = vrot.slane %v810_v50, %v415_v52 }
 0x5d8   :  { %v815_v60 = vmul.f32 %v814_v58, %v801_v51  ;;  %v816_v62 = vmul.f32 %v814_v58, %v802_v53  ;;  %v817_v55 = vmul.f32 %v814_v58, %v803_v54  ;;  %v818_v0 = vmul.f32 %v814_v58, %v804_v57 }
 0x5da   :  { %v823_v56 = vadd.f32 %v944_v59, %v815_v60  ;;  %v824_v49 = vadd.f32 %v944_v59, %v816_v62  ;;  %v825_v2 = vadd.f32 %v944_v59, %v817_v55  ;;  %v826_v3 = vadd.f32 %v944_v59, %v818_v0 }
 0x5dc   :  { %v827_v63 = vadd.f32 %v823_v56, %v1214_v23  ;;  %v828_v61 = vadd.f32 %v824_v49, %v1219_v24  ;;  %v829_v1 = vadd.f32 %v825_v2, %v1241_v31  ;;  %v830_v20 = vadd.f32 %v826_v3, %v1224_v25 }
 0x5de   :  { %v831_v52 = vmax.f32 %v827_v63, 0.0  ;;  %v832_v4 = vmax.f32 %v828_v61, 0.0  ;;  %v833_v22 = vmax.f32 %v829_v1, 0.0  ;;  %v834_v5 = vmax.f32 %v830_v20, 0.0 }
 0x5e0   :  { %835 = vst [vmem:[%s1496_s4] sm:$0xff] %v831_v52  ;;  %836 = vst [vmem:[%s1496_s4 + $0x8] sm:$0xff] %v832_v4 }
 0x5e1   :  { %837 = vst [vmem:[%s1496_s4 + $0x10] sm:$0xff] %v833_v22  ;;  %838 = vst [vmem:[%s1496_s4 + $0x18] sm:$0xff] %v834_v5 }

</bundles_post_ra>
